<compile_context>
chip_gen: v5e
topology: v5e:2x2
jax: 0.10.0
libtpu: 0.0.40
codegen_flags: <defaults>
</compile_context>

<pallas_src>
import functools

import jax
import jax.numpy as jnp
from jax.experimental import pallas as pl
from jax.experimental.pallas import tpu as pltpu


# ----------------------------------------------------------------------------- kernel

def _rate_predictor_kernel(
    hu_ref, hi_ref, hs_ref,                    # (TB, E) activations, natural dtype
    w1_ref, b1_ref, w2_ref, b2_ref,            # item_mlp: Linear(E,E) -> ReLU -> Linear(E,E)
    wp1u_ref, wp1i_ref, wp1s_ref, bp1_ref,     # predictor layer 1, wp1 pre-split (no concat)
    wp2_ref, bp2_ref,                          # predictor layer 2
    wp3_ref, bp3_ref,                          # predictor layer 3 as a (1,E_pad) row + SMEM scalar bias
    out_ref,                                   # (1, TB) lane-dense logits block
):
    f32 = jnp.float32
    mxu_dtype = w1_ref.dtype                   # compute/storage dtype of the weight matrices

    # Cast streamed activations in-VMEM (cheap VPU op; no wrapper HBM pass).
    hu = hu_ref[...].astype(mxu_dtype)
    hi = hi_ref[...].astype(mxu_dtype)
    hs = hs_ref[...].astype(mxu_dtype)

    # user_mlp is an empty nn.Sequential -> identity on hu.

    # item_mlp (f32 accumulation on the MXU, storage dtype between layers)
    t = jnp.dot(hi, w1_ref[...], preferred_element_type=f32) + b1_ref[...]
    t = jnp.maximum(t, 0.0).astype(mxu_dtype)
    item = jnp.dot(t, w2_ref[...], preferred_element_type=f32) + b2_ref[...]
    item = item.astype(mxu_dtype)

    # predictor layer 1 WITHOUT the feature-axis concat:
    #   x = [hu | item | hs] @ wp1  ==  hu@wp1_u + item@wp1_i + hs@wp1_s
    x = jnp.dot(hu, wp1u_ref[...], preferred_element_type=f32)
    x = x + jnp.dot(item, wp1i_ref[...], preferred_element_type=f32)
    x = x + jnp.dot(hs, wp1s_ref[...], preferred_element_type=f32)
    x = jnp.maximum(x + bp1_ref[...], 0.0).astype(mxu_dtype)

    # predictor layer 2
    x = jnp.dot(x, wp2_ref[...], preferred_element_type=f32) + bp2_ref[...]
    x = jnp.maximum(x, 0.0)

    # predictor layer 3: Linear(E,1) as VPU multiply + lane reduce (no N=1 MXU matmul)
    logits = jnp.sum(x * wp3_ref[...], axis=-1) + bp3_ref[0, 0]     # (TB,), bias from SMEM

    # Lane-dense store: batch lives on the lane axis of the (1, TB) output block.
    out_ref[...] = logits[None, :].astype(out_ref.dtype)


# --------------------------------------------------------------------------- wrapper

def _round_up(x, m):
    return ((x + m - 1) // m) * m


def _vmem_capacity_bytes():
    """Physical VMEM per TensorCore; conservative 64 MiB (v7x) if the query fails."""
    try:
        return int(pltpu.get_tpu_info().vmem_capacity_bytes)
    except Exception:
        return 64 * 1024 * 1024


def _choose_tile(B, E, E_pad, act_itemsize, w_itemsize, weight_bufs, vmem_bytes):
    """Batch tile TB and grid size G.

    Small batches: one full-array tile.  Otherwise TB is a multiple of 128 sized so
    streamed activations + f32 intermediates + the (single/double buffered) weight
    set fit the chip's VMEM with headroom, with G >= 2 so dual-TensorCore chips
    (v7x) shard the batch, and up to 2048 rows on 128 MiB chips (v5e/v6e).
    """
    B8 = _round_up(max(B, 1), 8)
    if B8 < 256:
        return B8, 1                                    # single block == full array

    weight_bytes = weight_bufs * (6 * E_pad * E_pad * w_itemsize + 6 * E_pad * 4)
    act_budget = int(vmem_bytes * 0.70) - weight_bytes
    # Per-row footprint: 3 streamed inputs (double-buffered, natural dtype) plus
    # ~8 live f32 (TB, E_pad) intermediates inside the kernel.
    per_row = 3 * 2 * E * act_itemsize + 8 * E_pad * 4 + 8
    tb_fit = max(128, min(2048, (max(act_budget, 0) // per_row) // 128 * 128))
    tb_half = max(128, (pl.cdiv(B8, 2) // 128) * 128)   # guarantee >= 2 grid steps
    tb = min(tb_fit, tb_half)
    return tb, pl.cdiv(B8, tb)


@functools.partial(
    jax.jit,
    static_argnames=("exposed", "compute_dtype", "single_buffer_weights"),
)
def _rate_predictor_impl(hu, hi, hs, params, *, exposed, compute_dtype,
                         single_buffer_weights):
    B, E = hu.shape
    E_pad = _round_up(E, 128)
    act_itemsize = jnp.dtype(hu.dtype).itemsize
    w_itemsize = jnp.dtype(compute_dtype).itemsize
    weight_bufs = 1 if single_buffer_weights else 2

    vmem_bytes = _vmem_capacity_bytes()
    TB, G = _choose_tile(B, E, E_pad, act_itemsize, w_itemsize, weight_bufs, vmem_bytes)
    B_out = G * TB

    pre = "ex" if exposed else "un"
    wp1, bp1 = params[f"{pre}_w1"], params[f"{pre}_b1"]
    wp2, bp2 = params[f"{pre}_w2"], params[f"{pre}_b2"]
    wp3, bp3 = params[f"{pre}_w3"], params[f"{pre}_b3"]

    # Split wp1 (3E, E) into the three (E, E) slices used instead of the concat.
    wp1_u, wp1_i, wp1_s = wp1[:E], wp1[E:2 * E], wp1[2 * E:]

    def pad_w(w, rows, cols):
        # Zero-pad weight to (rows, cols) and cast to the MXU storage dtype.
        # (Pads are no-ops / elided when already aligned.)
        r, c = w.shape
        return jnp.pad(w, ((0, rows - r), (0, cols - c))).astype(compute_dtype)

    def pad_b(b):
        # Bias rows stay f32 (added to f32 accumulators); zero-pad to E_pad lanes.
        return jnp.pad(b, ((0, 0), (0, E_pad - b.shape[1]))).astype(jnp.float32)

    inputs = (
        hu, hi, hs,                                                   # natural layout
        pad_w(params["item_w1"], E, E_pad), pad_b(params["item_b1"]),
        pad_w(params["item_w2"], E_pad, E_pad), pad_b(params["item_b2"]),
        pad_w(wp1_u, E, E_pad), pad_w(wp1_i, E_pad, E_pad), pad_w(wp1_s, E, E_pad),
        pad_b(bp1),
        pad_w(wp2, E_pad, E_pad), pad_b(bp2),
        pad_b(wp3.T),                                                 # (1, E_pad) f32 row
        bp3.astype(jnp.float32).reshape(1, 1),                        # SMEM scalar
    )

    # Resident weights/biases: constant block index; request single buffering so
    # they are not double-allocated in VMEM (falls back if unsupported).
    w_kwargs = dict(pipeline_mode=pl.Buffered(1)) if single_buffer_weights else {}

    act_spec = pl.BlockSpec((TB, E), lambda i: (i, 0))                # streamed per batch tile
    w_in_spec = pl.BlockSpec((E, E_pad), lambda i: (0, 0), **w_kwargs)
    w_sq_spec = pl.BlockSpec((E_pad, E_pad), lambda i: (0, 0), **w_kwargs)
    vec_spec = pl.BlockSpec((1, E_pad), lambda i: (0, 0), **w_kwargs)
    smem_spec = pl.BlockSpec(memory_space=pltpu.MemorySpace.SMEM)     # bp3 scalar

    in_specs = [
        act_spec, act_spec, act_spec,
        w_in_spec, vec_spec, w_sq_spec, vec_spec,
        w_in_spec, w_sq_spec, w_in_spec, vec_spec,
        w_sq_spec, vec_spec,
        vec_spec, smem_spec,
    ]
    out_spec = pl.BlockSpec((1, TB), lambda i: (0, i))                # lane-dense logits

    # Working-set estimate -> scoped VMEM limit, clamped under physical VMEM.
    est = (
        weight_bufs * (6 * E_pad * E_pad * w_itemsize + 6 * E_pad * 4)
        + 3 * 2 * TB * E * act_itemsize
        + 8 * TB * E_pad * 4
        + 2 * TB * 4
    )
    vmem_cap = max(vmem_bytes - 8 * 1024 * 1024, 32 * 1024 * 1024)
    vmem_limit = int(min(max(int(est * 1.5), 32 * 1024 * 1024), vmem_cap))

    # Advisory cost so XLA overlaps surrounding ops with the kernel.
    flops = 2 * B_out * (3 * E * E_pad + 3 * E_pad * E_pad + E_pad)
    bytes_accessed = (3 * B * E * act_itemsize
                      + 6 * E_pad * E_pad * w_itemsize
                      + 6 * E_pad * 4
                      + B_out * 4)
    cost = pl.CostEstimate(flops=int(flops), transcendentals=0,
                           bytes_accessed=int(bytes_accessed))

    out = pl.pallas_call(
        _rate_predictor_kernel,
        out_shape=jax.ShapeDtypeStruct((1, B_out), jnp.float32),
        grid=(G,),
        in_specs=in_specs,
        out_specs=out_spec,
        compiler_params=pltpu.CompilerParams(
            dimension_semantics=("parallel",),
            vmem_limit_bytes=vmem_limit,
        ),
        cost_estimate=cost,
    )(*inputs)

    # torch .squeeze(): (B,1) -> (B,) for B>1, scalar for B==1.
    return jnp.squeeze(out[0, :B])


def rate_predictor(hu, hi, hs, params, exposed: bool, compute_dtype=jnp.bfloat16):
    """Fused RatePredictor forward.  compute_dtype = MXU/storage dtype for weight
    matrices and in-kernel activations (f32 accumulation, f32 biases either way)."""
    try:
        return _rate_predictor_impl(hu, hi, hs, params, exposed=exposed,
                                    compute_dtype=compute_dtype,
                                    single_buffer_weights=True)
    except Exception:
        # pl.Buffered(1) (single-buffered resident weights) unsupported on this
        # jax/backend combination -> default double-buffered constant specs.
        return _rate_predictor_impl(hu, hi, hs, params, exposed=exposed,
                                    compute_dtype=compute_dtype,
                                    single_buffer_weights=False)


# ------------------------------------------------------------------- params & reference

def init_params(key, edim, dtype=jnp.float32):
    """Deterministic synthetic parameters. Weights stored as (in, out)."""
    ks = jax.random.split(key, 16)

    def lin(kw, kb, fan_in, fan_out):
        bound = 1.0 / jnp.sqrt(fan_in)
        w = jax.random.uniform(kw, (fan_in, fan_out), dtype, -bound, bound)
        b = jax.random.uniform(kb, (1, fan_out), dtype, -bound, bound)
        return w, b

    params = {}
    params["item_w1"], params["item_b1"] = lin(ks[0], ks[1], edim, edim)
    params["item_w2"], params["item_b2"] = lin(ks[2], ks[3], edim, edim)
    params["un_w1"], params["un_b1"] = lin(ks[4], ks[5], 3 * edim, edim)
    params["un_w2"], params["un_b2"] = lin(ks[6], ks[7], edim, edim)
    params["un_w3"], params["un_b3"] = lin(ks[8], ks[9], edim, 1)
    params["ex_w1"], params["ex_b1"] = lin(ks[10], ks[11], 3 * edim, edim)
    params["ex_w2"], params["ex_b2"] = lin(ks[12], ks[13], edim, edim)
    params["ex_w3"], params["ex_b3"] = lin(ks[14], ks[15], edim, 1)
    return params


def _reference(hu, hi, hs, params, exposed: bool):
    """Pure-JAX reference matching the PyTorch module."""
    t = jnp.maximum(hi @ params["item_w1"] + params["item_b1"], 0.0)
    item = t @ params["item_w2"] + params["item_b2"]
    h = jnp.concatenate([hu, item, hs], axis=-1)
    pre = "ex" if exposed else "un"
    x = jnp.maximum(h @ params[f"{pre}_w1"] + params[f"{pre}_b1"], 0.0)
    x = jnp.maximum(x @ params[f"{pre}_w2"] + params[f"{pre}_b2"], 0.0)
    logits = x @ params[f"{pre}_w3"] + params[f"{pre}_b3"]
    return jnp.squeeze(logits)


# -------------------------------------------------------------------------------- main

if __name__ == "__main__":
    B, edim = 8, 32  # small shapes: batch=8, hidden=32

    key = jax.random.PRNGKey(0)
    k_hu, k_hi, k_hs, k_p = jax.random.split(key, 4)
    hu = jax.random.normal(k_hu, (B, edim), jnp.float32)
    hi = jax.random.normal(k_hi, (B, edim), jnp.float32)
    hs = jax.random.normal(k_hs, (B, edim), jnp.float32)
    params = init_params(k_p, edim)

    # Strict f32 path, both predictor branches.
    out_ex_f32 = rate_predictor(hu, hi, hs, params, exposed=True,
                                compute_dtype=jnp.float32)
    out_un_f32 = rate_predictor(hu, hi, hs, params, exposed=False,
                                compute_dtype=jnp.float32)
    jax.block_until_ready((out_ex_f32, out_un_f32))
    ref_ex = _reference(hu, hi, hs, params, True)
    ref_un = _reference(hu, hi, hs, params, False)
    assert out_ex_f32.shape == (B,) and out_un_f32.shape == (B,)
    assert jnp.allclose(out_ex_f32, ref_ex, atol=1e-4, rtol=1e-4)
    assert jnp.allclose(out_un_f32, ref_un, atol=1e-4, rtol=1e-4)

    # Default perf path: bf16 weights / in-kernel bf16 activations, f32 accumulation.
    out_ex_bf16 = rate_predictor(hu, hi, hs, params, exposed=True)
    jax.block_until_ready(out_ex_bf16)
    assert out_ex_bf16.shape == (B,)
    assert jnp.allclose(out_ex_bf16, ref_ex, atol=1e-1, rtol=1e-1)

    # Larger batch: multi-tile batch grid (G >= 2, both TCs busy on v7x), no
    # wrapper-side activation padding (the last tile handles the ragged rows).
    B2 = 520
    k1, k2, k3 = jax.random.split(jax.random.PRNGKey(1), 3)
    hu2 = jax.random.normal(k1, (B2, edim), jnp.float32)
    hi2 = jax.random.normal(k2, (B2, edim), jnp.float32)
    hs2 = jax.random.normal(k3, (B2, edim), jnp.float32)
    out2 = rate_predictor(hu2, hi2, hs2, params, exposed=False,
                          compute_dtype=jnp.float32)
    jax.block_until_ready(out2)
    ref2 = _reference(hu2, hi2, hs2, params, False)
    assert out2.shape == (B2,)
    assert jnp.allclose(out2, ref2, atol=1e-4, rtol=1e-4)

    out2_bf16 = rate_predictor(hu2, hi2, hs2, params, exposed=False)
    jax.block_until_ready(out2_bf16)
    assert out2_bf16.shape == (B2,)
    assert jnp.allclose(out2_bf16, ref2, atol=1e-1, rtol=1e-1)

    print("KERNEL_OK")
</pallas_src>

<mosaic_0001>
module attributes {stable_mosaic.version = 11 : i64} {
  func.func @_rate_predictor_kernel(%arg0: i32, %arg1: memref<8x32xf32, #tpu.memory_space<vmem>>, %arg2: memref<8x32xf32, #tpu.memory_space<vmem>>, %arg3: memref<8x32xf32, #tpu.memory_space<vmem>>, %arg4: memref<32x128xf32, #tpu.memory_space<vmem>>, %arg5: memref<1x128xf32, #tpu.memory_space<vmem>>, %arg6: memref<128x128xf32, #tpu.memory_space<vmem>>, %arg7: memref<1x128xf32, #tpu.memory_space<vmem>>, %arg8: memref<32x128xf32, #tpu.memory_space<vmem>>, %arg9: memref<128x128xf32, #tpu.memory_space<vmem>>, %arg10: memref<32x128xf32, #tpu.memory_space<vmem>>, %arg11: memref<1x128xf32, #tpu.memory_space<vmem>>, %arg12: memref<128x128xf32, #tpu.memory_space<vmem>>, %arg13: memref<1x128xf32, #tpu.memory_space<vmem>>, %arg14: memref<1x128xf32, #tpu.memory_space<vmem>>, %arg15: memref<1x1xf32, #tpu.memory_space<smem>>, %arg16: memref<1x8xf32, #tpu.memory_space<vmem>>) attributes {dimension_semantics = [#tpu.dimension_semantics<parallel>], iteration_bounds = array<i64: 1>, scalar_prefetch = 0 : i64, scratch_operands = 0 : i64, tpu.core_type = #tpu.core_type<tc>, window_params = [{transform_indices = @transform_0, window_bounds = array<i64: 8, 32>}, {transform_indices = @transform_1, window_bounds = array<i64: 8, 32>}, {transform_indices = @transform_2, window_bounds = array<i64: 8, 32>}, {pipeline_mode = #tpu.pipeline_mode<synchronous>, transform_indices = @transform_3, window_bounds = array<i64: 32, 128>}, {pipeline_mode = #tpu.pipeline_mode<synchronous>, transform_indices = @transform_4, window_bounds = array<i64: 1, 128>}, {pipeline_mode = #tpu.pipeline_mode<synchronous>, transform_indices = @transform_5, window_bounds = array<i64: 128, 128>}, {pipeline_mode = #tpu.pipeline_mode<synchronous>, transform_indices = @transform_6, window_bounds = array<i64: 1, 128>}, {pipeline_mode = #tpu.pipeline_mode<synchronous>, transform_indices = @transform_7, window_bounds = array<i64: 32, 128>}, {pipeline_mode = #tpu.pipeline_mode<synchronous>, transform_indices = @transform_8, window_bounds = array<i64: 128, 128>}, {pipeline_mode = #tpu.pipeline_mode<synchronous>, transform_indices = @transform_9, window_bounds = array<i64: 32, 128>}, {pipeline_mode = #tpu.pipeline_mode<synchronous>, transform_indices = @transform_10, window_bounds = array<i64: 1, 128>}, {pipeline_mode = #tpu.pipeline_mode<synchronous>, transform_indices = @transform_11, window_bounds = array<i64: 128, 128>}, {pipeline_mode = #tpu.pipeline_mode<synchronous>, transform_indices = @transform_12, window_bounds = array<i64: 1, 128>}, {pipeline_mode = #tpu.pipeline_mode<synchronous>, transform_indices = @transform_13, window_bounds = array<i64: 1, 128>}, {transform_indices = @transform_14, window_bounds = array<i64: 1, 1>}, {transform_indices = @transform_15, window_bounds = array<i64: 1, 8>}]} {
    %c0 = arith.constant 0 : index
    %c0_0 = arith.constant 0 : index
    %0 = vector.load %arg1[%c0, %c0_0] : memref<8x32xf32, #tpu.memory_space<vmem>>, vector<8x32xf32>
    %c0_1 = arith.constant 0 : index
    %c0_2 = arith.constant 0 : index
    %1 = vector.load %arg2[%c0_1, %c0_2] : memref<8x32xf32, #tpu.memory_space<vmem>>, vector<8x32xf32>
    %c0_3 = arith.constant 0 : index
    %c0_4 = arith.constant 0 : index
    %2 = vector.load %arg3[%c0_3, %c0_4] : memref<8x32xf32, #tpu.memory_space<vmem>>, vector<8x32xf32>
    %c0_5 = arith.constant 0 : index
    %c0_6 = arith.constant 0 : index
    %3 = vector.load %arg4[%c0_5, %c0_6] : memref<32x128xf32, #tpu.memory_space<vmem>>, vector<32x128xf32>
    %cst = arith.constant dense<0.000000e+00> : vector<8x128xf32>
    %4 = tpu.matmul %1, %3, %cst {dimension_numbers = #tpu.dot_dimension_numbers<[1], [0], [0], [1], [0, 0, 1, 1], [], []>} : vector<8x32xf32>, vector<32x128xf32>, vector<8x128xf32> -> vector<8x128xf32>
    %c0_7 = arith.constant 0 : index
    %c0_8 = arith.constant 0 : index
    %5 = vector.load %arg5[%c0_7, %c0_8] : memref<1x128xf32, #tpu.memory_space<vmem>>, vector<1x128xf32>
    %6 = vector.broadcast %5 : vector<1x128xf32> to vector<8x128xf32>
    %7 = arith.addf %4, %6 : vector<8x128xf32>
    %cst_9 = arith.constant 0.000000e+00 : f32
    %8 = vector.broadcast %cst_9 : f32 to vector<8x128xf32>
    %9 = arith.maximumf %7, %8 : vector<8x128xf32>
    %c0_10 = arith.constant 0 : index
    %c0_11 = arith.constant 0 : index
    %10 = vector.load %arg6[%c0_10, %c0_11] : memref<128x128xf32, #tpu.memory_space<vmem>>, vector<128x128xf32>
    %cst_12 = arith.constant dense<0.000000e+00> : vector<8x128xf32>
    %11 = tpu.matmul %9, %10, %cst_12 {dimension_numbers = #tpu.dot_dimension_numbers<[1], [0], [0], [1], [0, 0, 1, 1], [], []>} : vector<8x128xf32>, vector<128x128xf32>, vector<8x128xf32> -> vector<8x128xf32>
    %c0_13 = arith.constant 0 : index
    %c0_14 = arith.constant 0 : index
    %12 = vector.load %arg7[%c0_13, %c0_14] : memref<1x128xf32, #tpu.memory_space<vmem>>, vector<1x128xf32>
    %13 = vector.broadcast %12 : vector<1x128xf32> to vector<8x128xf32>
    %14 = arith.addf %11, %13 : vector<8x128xf32>
    %c0_15 = arith.constant 0 : index
    %c0_16 = arith.constant 0 : index
    %15 = vector.load %arg8[%c0_15, %c0_16] : memref<32x128xf32, #tpu.memory_space<vmem>>, vector<32x128xf32>
    %cst_17 = arith.constant dense<0.000000e+00> : vector<8x128xf32>
    %16 = tpu.matmul %0, %15, %cst_17 {dimension_numbers = #tpu.dot_dimension_numbers<[1], [0], [0], [1], [0, 0, 1, 1], [], []>} : vector<8x32xf32>, vector<32x128xf32>, vector<8x128xf32> -> vector<8x128xf32>
    %c0_18 = arith.constant 0 : index
    %c0_19 = arith.constant 0 : index
    %17 = vector.load %arg9[%c0_18, %c0_19] : memref<128x128xf32, #tpu.memory_space<vmem>>, vector<128x128xf32>
    %cst_20 = arith.constant dense<0.000000e+00> : vector<8x128xf32>
    %18 = tpu.matmul %14, %17, %cst_20 {dimension_numbers = #tpu.dot_dimension_numbers<[1], [0], [0], [1], [0, 0, 1, 1], [], []>} : vector<8x128xf32>, vector<128x128xf32>, vector<8x128xf32> -> vector<8x128xf32>
    %19 = arith.addf %16, %18 : vector<8x128xf32>
    %c0_21 = arith.constant 0 : index
    %c0_22 = arith.constant 0 : index
    %20 = vector.load %arg10[%c0_21, %c0_22] : memref<32x128xf32, #tpu.memory_space<vmem>>, vector<32x128xf32>
    %cst_23 = arith.constant dense<0.000000e+00> : vector<8x128xf32>
    %21 = tpu.matmul %2, %20, %cst_23 {dimension_numbers = #tpu.dot_dimension_numbers<[1], [0], [0], [1], [0, 0, 1, 1], [], []>} : vector<8x32xf32>, vector<32x128xf32>, vector<8x128xf32> -> vector<8x128xf32>
    %22 = arith.addf %19, %21 : vector<8x128xf32>
    %c0_24 = arith.constant 0 : index
    %c0_25 = arith.constant 0 : index
    %23 = vector.load %arg11[%c0_24, %c0_25] : memref<1x128xf32, #tpu.memory_space<vmem>>, vector<1x128xf32>
    %24 = vector.broadcast %23 : vector<1x128xf32> to vector<8x128xf32>
    %25 = arith.addf %22, %24 : vector<8x128xf32>
    %cst_26 = arith.constant 0.000000e+00 : f32
    %26 = vector.broadcast %cst_26 : f32 to vector<8x128xf32>
    %27 = arith.maximumf %25, %26 : vector<8x128xf32>
    %c0_27 = arith.constant 0 : index
    %c0_28 = arith.constant 0 : index
    %28 = vector.load %arg12[%c0_27, %c0_28] : memref<128x128xf32, #tpu.memory_space<vmem>>, vector<128x128xf32>
    %cst_29 = arith.constant dense<0.000000e+00> : vector<8x128xf32>
    %29 = tpu.matmul %27, %28, %cst_29 {dimension_numbers = #tpu.dot_dimension_numbers<[1], [0], [0], [1], [0, 0, 1, 1], [], []>} : vector<8x128xf32>, vector<128x128xf32>, vector<8x128xf32> -> vector<8x128xf32>
    %c0_30 = arith.constant 0 : index
    %c0_31 = arith.constant 0 : index
    %30 = vector.load %arg13[%c0_30, %c0_31] : memref<1x128xf32, #tpu.memory_space<vmem>>, vector<1x128xf32>
    %31 = vector.broadcast %30 : vector<1x128xf32> to vector<8x128xf32>
    %32 = arith.addf %29, %31 : vector<8x128xf32>
    %cst_32 = arith.constant 0.000000e+00 : f32
    %33 = vector.broadcast %cst_32 : f32 to vector<8x128xf32>
    %34 = arith.maximumf %32, %33 : vector<8x128xf32>
    %c0_33 = arith.constant 0 : index
    %c0_34 = arith.constant 0 : index
    %35 = vector.load %arg14[%c0_33, %c0_34] : memref<1x128xf32, #tpu.memory_space<vmem>>, vector<1x128xf32>
    %36 = vector.broadcast %35 : vector<1x128xf32> to vector<8x128xf32>
    %37 = arith.mulf %34, %36 : vector<8x128xf32>
    %cst_35 = arith.constant dense<0.000000e+00> : vector<8xf32>
    %38 = vector.multi_reduction <add>, %37, %cst_35 [1] : vector<8x128xf32> to vector<8xf32>
    %c0_36 = arith.constant 0 : index
    %c0_37 = arith.constant 0 : index
    %39 = memref.load %arg15[%c0_36, %c0_37] : memref<1x1xf32, #tpu.memory_space<smem>>
    %40 = vector.broadcast %39 : f32 to vector<8xf32>
    %41 = arith.addf %38, %40 : vector<8xf32>
    %42 = vector.shape_cast %41 : vector<8xf32> to vector<1x8xf32>
    %c0_38 = arith.constant 0 : index
    %c0_39 = arith.constant 0 : index
    %43 = vector.load %arg16[%c0_38, %c0_39] : memref<1x8xf32, #tpu.memory_space<vmem>>, vector<1x8xf32>
    tpu.vector_store %arg16[%c0_38, %c0_39], %42 {strides = array<i32>} : memref<1x8xf32, #tpu.memory_space<vmem>>, vector<1x8xf32>,
    return
  }
  func.func @transform_0(%arg0: i32) -> (i32, i32) {
    %c0_i32 = arith.constant 0 : i32
    %c0_i32_0 = arith.constant 0 : i32
    return %arg0, %c0_i32 : i32, i32
  }
  func.func @transform_1(%arg0: i32) -> (i32, i32) {
    %c0_i32 = arith.constant 0 : i32
    %c0_i32_0 = arith.constant 0 : i32
    return %arg0, %c0_i32 : i32, i32
  }
  func.func @transform_2(%arg0: i32) -> (i32, i32) {
    %c0_i32 = arith.constant 0 : i32
    %c0_i32_0 = arith.constant 0 : i32
    return %arg0, %c0_i32 : i32, i32
  }
  func.func @transform_3(%arg0: i32) -> (i32, i32) {
    %c0_i32 = arith.constant 0 : i32
    %c0_i32_0 = arith.constant 0 : i32
    %c0_i32_1 = arith.constant 0 : i32
    return %c0_i32, %c0_i32_0 : i32, i32
  }
  func.func @transform_4(%arg0: i32) -> (i32, i32) {
    %c0_i32 = arith.constant 0 : i32
    %c0_i32_0 = arith.constant 0 : i32
    %c0_i32_1 = arith.constant 0 : i32
    return %c0_i32, %c0_i32_0 : i32, i32
  }
  func.func @transform_5(%arg0: i32) -> (i32, i32) {
    %c0_i32 = arith.constant 0 : i32
    %c0_i32_0 = arith.constant 0 : i32
    %c0_i32_1 = arith.constant 0 : i32
    return %c0_i32, %c0_i32_0 : i32, i32
  }
  func.func @transform_6(%arg0: i32) -> (i32, i32) {
    %c0_i32 = arith.constant 0 : i32
    %c0_i32_0 = arith.constant 0 : i32
    %c0_i32_1 = arith.constant 0 : i32
    return %c0_i32, %c0_i32_0 : i32, i32
  }
  func.func @transform_7(%arg0: i32) -> (i32, i32) {
    %c0_i32 = arith.constant 0 : i32
    %c0_i32_0 = arith.constant 0 : i32
    %c0_i32_1 = arith.constant 0 : i32
    return %c0_i32, %c0_i32_0 : i32, i32
  }
  func.func @transform_8(%arg0: i32) -> (i32, i32) {
    %c0_i32 = arith.constant 0 : i32
    %c0_i32_0 = arith.constant 0 : i32
    %c0_i32_1 = arith.constant 0 : i32
    return %c0_i32, %c0_i32_0 : i32, i32
  }
  func.func @transform_9(%arg0: i32) -> (i32, i32) {
    %c0_i32 = arith.constant 0 : i32
    %c0_i32_0 = arith.constant 0 : i32
    %c0_i32_1 = arith.constant 0 : i32
    return %c0_i32, %c0_i32_0 : i32, i32
  }
  func.func @transform_10(%arg0: i32) -> (i32, i32) {
    %c0_i32 = arith.constant 0 : i32
    %c0_i32_0 = arith.constant 0 : i32
    %c0_i32_1 = arith.constant 0 : i32
    return %c0_i32, %c0_i32_0 : i32, i32
  }
  func.func @transform_11(%arg0: i32) -> (i32, i32) {
    %c0_i32 = arith.constant 0 : i32
    %c0_i32_0 = arith.constant 0 : i32
    %c0_i32_1 = arith.constant 0 : i32
    return %c0_i32, %c0_i32_0 : i32, i32
  }
  func.func @transform_12(%arg0: i32) -> (i32, i32) {
    %c0_i32 = arith.constant 0 : i32
    %c0_i32_0 = arith.constant 0 : i32
    %c0_i32_1 = arith.constant 0 : i32
    return %c0_i32, %c0_i32_0 : i32, i32
  }
  func.func @transform_13(%arg0: i32) -> (i32, i32) {
    %c0_i32 = arith.constant 0 : i32
    %c0_i32_0 = arith.constant 0 : i32
    %c0_i32_1 = arith.constant 0 : i32
    return %c0_i32, %c0_i32_0 : i32, i32
  }
  func.func @transform_14(%arg0: i32) -> (i32, i32) {
    %c0_i32 = arith.constant 0 : i32
    %c0_i32_0 = arith.constant 0 : i32
    %c0_i32_1 = arith.constant 0 : i32
    return %c0_i32, %c0_i32_0 : i32, i32
  }
  func.func @transform_15(%arg0: i32) -> (i32, i32) {
    %c0_i32 = arith.constant 0 : i32
    %c0_i32_0 = arith.constant 0 : i32
    return %c0_i32, %arg0 : i32, i32
  }
}

module attributes {stable_mosaic.version = 11 : i64} {
  func.func @_rate_predictor_kernel(%arg0: i32, %arg1: memref<8x32xf32, #tpu.memory_space<vmem>>, %arg2: memref<8x32xf32, #tpu.memory_space<vmem>>, %arg3: memref<8x32xf32, #tpu.memory_space<vmem>>, %arg4: memref<32x128xf32, #tpu.memory_space<vmem>>, %arg5: memref<1x128xf32, #tpu.memory_space<vmem>>, %arg6: memref<128x128xf32, #tpu.memory_space<vmem>>, %arg7: memref<1x128xf32, #tpu.memory_space<vmem>>, %arg8: memref<32x128xf32, #tpu.memory_space<vmem>>, %arg9: memref<128x128xf32, #tpu.memory_space<vmem>>, %arg10: memref<32x128xf32, #tpu.memory_space<vmem>>, %arg11: memref<1x128xf32, #tpu.memory_space<vmem>>, %arg12: memref<128x128xf32, #tpu.memory_space<vmem>>, %arg13: memref<1x128xf32, #tpu.memory_space<vmem>>, %arg14: memref<1x128xf32, #tpu.memory_space<vmem>>, %arg15: memref<1x1xf32, #tpu.memory_space<smem>>, %arg16: memref<1x8xf32, #tpu.memory_space<vmem>>) attributes {dimension_semantics = [#tpu.dimension_semantics<parallel>], iteration_bounds = array<i64: 1>, scalar_prefetch = 0 : i64, scratch_operands = 0 : i64, tpu.core_type = #tpu.core_type<tc>, window_params = [{transform_indices = @transform_0, window_bounds = array<i64: 8, 32>}, {transform_indices = @transform_1, window_bounds = array<i64: 8, 32>}, {transform_indices = @transform_2, window_bounds = array<i64: 8, 32>}, {pipeline_mode = #tpu.pipeline_mode<synchronous>, transform_indices = @transform_3, window_bounds = array<i64: 32, 128>}, {pipeline_mode = #tpu.pipeline_mode<synchronous>, transform_indices = @transform_4, window_bounds = array<i64: 1, 128>}, {pipeline_mode = #tpu.pipeline_mode<synchronous>, transform_indices = @transform_5, window_bounds = array<i64: 128, 128>}, {pipeline_mode = #tpu.pipeline_mode<synchronous>, transform_indices = @transform_6, window_bounds = array<i64: 1, 128>}, {pipeline_mode = #tpu.pipeline_mode<synchronous>, transform_indices = @transform_7, window_bounds = array<i64: 32, 128>}, {pipeline_mode = #tpu.pipeline_mode<synchronous>, transform_indices = @transform_8, window_bounds = array<i64: 128, 128>}, {pipeline_mode = #tpu.pipeline_mode<synchronous>, transform_indices = @transform_9, window_bounds = array<i64: 32, 128>}, {pipeline_mode = #tpu.pipeline_mode<synchronous>, transform_indices = @transform_10, window_bounds = array<i64: 1, 128>}, {pipeline_mode = #tpu.pipeline_mode<synchronous>, transform_indices = @transform_11, window_bounds = array<i64: 128, 128>}, {pipeline_mode = #tpu.pipeline_mode<synchronous>, transform_indices = @transform_12, window_bounds = array<i64: 1, 128>}, {pipeline_mode = #tpu.pipeline_mode<synchronous>, transform_indices = @transform_13, window_bounds = array<i64: 1, 128>}, {transform_indices = @transform_14, window_bounds = array<i64: 1, 1>}, {transform_indices = @transform_15, window_bounds = array<i64: 1, 8>}]} {
    %c0 = arith.constant 0 : index
    %c0_0 = arith.constant 0 : index
    %0 = vector.load %arg1[%c0, %c0_0] : memref<8x32xf32, #tpu.memory_space<vmem>>, vector<8x32xf32>
    %c0_1 = arith.constant 0 : index
    %c0_2 = arith.constant 0 : index
    %1 = vector.load %arg2[%c0_1, %c0_2] : memref<8x32xf32, #tpu.memory_space<vmem>>, vector<8x32xf32>
    %c0_3 = arith.constant 0 : index
    %c0_4 = arith.constant 0 : index
    %2 = vector.load %arg3[%c0_3, %c0_4] : memref<8x32xf32, #tpu.memory_space<vmem>>, vector<8x32xf32>
    %c0_5 = arith.constant 0 : index
    %c0_6 = arith.constant 0 : index
    %3 = vector.load %arg4[%c0_5, %c0_6] : memref<32x128xf32, #tpu.memory_space<vmem>>, vector<32x128xf32>
    %cst = arith.constant dense<0.000000e+00> : vector<8x128xf32>
    %4 = tpu.matmul %1, %3, %cst {dimension_numbers = #tpu.dot_dimension_numbers<[1], [0], [0], [1], [0, 0, 1, 1], [], []>} : vector<8x32xf32>, vector<32x128xf32>, vector<8x128xf32> -> vector<8x128xf32>
    %c0_7 = arith.constant 0 : index
    %c0_8 = arith.constant 0 : index
    %5 = vector.load %arg5[%c0_7, %c0_8] : memref<1x128xf32, #tpu.memory_space<vmem>>, vector<1x128xf32>
    %6 = vector.broadcast %5 : vector<1x128xf32> to vector<8x128xf32>
    %7 = arith.addf %4, %6 : vector<8x128xf32>
    %cst_9 = arith.constant 0.000000e+00 : f32
    %8 = vector.broadcast %cst_9 : f32 to vector<8x128xf32>
    %9 = arith.maximumf %7, %8 : vector<8x128xf32>
    %c0_10 = arith.constant 0 : index
    %c0_11 = arith.constant 0 : index
    %10 = vector.load %arg6[%c0_10, %c0_11] : memref<128x128xf32, #tpu.memory_space<vmem>>, vector<128x128xf32>
    %cst_12 = arith.constant dense<0.000000e+00> : vector<8x128xf32>
    %11 = tpu.matmul %9, %10, %cst_12 {dimension_numbers = #tpu.dot_dimension_numbers<[1], [0], [0], [1], [0, 0, 1, 1], [], []>} : vector<8x128xf32>, vector<128x128xf32>, vector<8x128xf32> -> vector<8x128xf32>
    %c0_13 = arith.constant 0 : index
    %c0_14 = arith.constant 0 : index
    %12 = vector.load %arg7[%c0_13, %c0_14] : memref<1x128xf32, #tpu.memory_space<vmem>>, vector<1x128xf32>
    %13 = vector.broadcast %12 : vector<1x128xf32> to vector<8x128xf32>
    %14 = arith.addf %11, %13 : vector<8x128xf32>
    %c0_15 = arith.constant 0 : index
    %c0_16 = arith.constant 0 : index
    %15 = vector.load %arg8[%c0_15, %c0_16] : memref<32x128xf32, #tpu.memory_space<vmem>>, vector<32x128xf32>
    %cst_17 = arith.constant dense<0.000000e+00> : vector<8x128xf32>
    %16 = tpu.matmul %0, %15, %cst_17 {dimension_numbers = #tpu.dot_dimension_numbers<[1], [0], [0], [1], [0, 0, 1, 1], [], []>} : vector<8x32xf32>, vector<32x128xf32>, vector<8x128xf32> -> vector<8x128xf32>
    %c0_18 = arith.constant 0 : index
    %c0_19 = arith.constant 0 : index
    %17 = vector.load %arg9[%c0_18, %c0_19] : memref<128x128xf32, #tpu.memory_space<vmem>>, vector<128x128xf32>
    %cst_20 = arith.constant dense<0.000000e+00> : vector<8x128xf32>
    %18 = tpu.matmul %14, %17, %cst_20 {dimension_numbers = #tpu.dot_dimension_numbers<[1], [0], [0], [1], [0, 0, 1, 1], [], []>} : vector<8x128xf32>, vector<128x128xf32>, vector<8x128xf32> -> vector<8x128xf32>
    %19 = arith.addf %16, %18 : vector<8x128xf32>
    %c0_21 = arith.constant 0 : index
    %c0_22 = arith.constant 0 : index
    %20 = vector.load %arg10[%c0_21, %c0_22] : memref<32x128xf32, #tpu.memory_space<vmem>>, vector<32x128xf32>
    %cst_23 = arith.constant dense<0.000000e+00> : vector<8x128xf32>
    %21 = tpu.matmul %2, %20, %cst_23 {dimension_numbers = #tpu.dot_dimension_numbers<[1], [0], [0], [1], [0, 0, 1, 1], [], []>} : vector<8x32xf32>, vector<32x128xf32>, vector<8x128xf32> -> vector<8x128xf32>
    %22 = arith.addf %19, %21 : vector<8x128xf32>
    %c0_24 = arith.constant 0 : index
    %c0_25 = arith.constant 0 : index
    %23 = vector.load %arg11[%c0_24, %c0_25] : memref<1x128xf32, #tpu.memory_space<vmem>>, vector<1x128xf32>
    %24 = vector.broadcast %23 : vector<1x128xf32> to vector<8x128xf32>
    %25 = arith.addf %22, %24 : vector<8x128xf32>
    %cst_26 = arith.constant 0.000000e+00 : f32
    %26 = vector.broadcast %cst_26 : f32 to vector<8x128xf32>
    %27 = arith.maximumf %25, %26 : vector<8x128xf32>
    %c0_27 = arith.constant 0 : index
    %c0_28 = arith.constant 0 : index
    %28 = vector.load %arg12[%c0_27, %c0_28] : memref<128x128xf32, #tpu.memory_space<vmem>>, vector<128x128xf32>
    %cst_29 = arith.constant dense<0.000000e+00> : vector<8x128xf32>
    %29 = tpu.matmul %27, %28, %cst_29 {dimension_numbers = #tpu.dot_dimension_numbers<[1], [0], [0], [1], [0, 0, 1, 1], [], []>} : vector<8x128xf32>, vector<128x128xf32>, vector<8x128xf32> -> vector<8x128xf32>
    %c0_30 = arith.constant 0 : index
    %c0_31 = arith.constant 0 : index
    %30 = vector.load %arg13[%c0_30, %c0_31] : memref<1x128xf32, #tpu.memory_space<vmem>>, vector<1x128xf32>
    %31 = vector.broadcast %30 : vector<1x128xf32> to vector<8x128xf32>
    %32 = arith.addf %29, %31 : vector<8x128xf32>
    %cst_32 = arith.constant 0.000000e+00 : f32
    %33 = vector.broadcast %cst_32 : f32 to vector<8x128xf32>
    %34 = arith.maximumf %32, %33 : vector<8x128xf32>
    %c0_33 = arith.constant 0 : index
    %c0_34 = arith.constant 0 : index
    %35 = vector.load %arg14[%c0_33, %c0_34] : memref<1x128xf32, #tpu.memory_space<vmem>>, vector<1x128xf32>
    %36 = vector.broadcast %35 : vector<1x128xf32> to vector<8x128xf32>
    %37 = arith.mulf %34, %36 : vector<8x128xf32>
    %cst_35 = arith.constant dense<0.000000e+00> : vector<8xf32>
    %38 = vector.multi_reduction <add>, %37, %cst_35 [1] : vector<8x128xf32> to vector<8xf32>
    %c0_36 = arith.constant 0 : index
    %c0_37 = arith.constant 0 : index
    %39 = memref.load %arg15[%c0_36, %c0_37] : memref<1x1xf32, #tpu.memory_space<smem>>
    %40 = vector.broadcast %39 : f32 to vector<8xf32>
    %41 = arith.addf %38, %40 : vector<8xf32>
    %42 = vector.shape_cast %41 : vector<8xf32> to vector<1x8xf32>
    %c0_38 = arith.constant 0 : index
    %c0_39 = arith.constant 0 : index
    %43 = vector.load %arg16[%c0_38, %c0_39] : memref<1x8xf32, #tpu.memory_space<vmem>>, vector<1x8xf32>
    tpu.vector_store %arg16[%c0_38, %c0_39], %42 {strides = array<i32>} : memref<1x8xf32, #tpu.memory_space<vmem>>, vector<1x8xf32>,
    return
  }
  func.func @transform_0(%arg0: i32) -> (i32, i32) {
    %c0_i32 = arith.constant 0 : i32
    %c0_i32_0 = arith.constant 0 : i32
    return %arg0, %c0_i32 : i32, i32
  }
  func.func @transform_1(%arg0: i32) -> (i32, i32) {
    %c0_i32 = arith.constant 0 : i32
    %c0_i32_0 = arith.constant 0 : i32
    return %arg0, %c0_i32 : i32, i32
  }
  func.func @transform_2(%arg0: i32) -> (i32, i32) {
    %c0_i32 = arith.constant 0 : i32
    %c0_i32_0 = arith.constant 0 : i32
    return %arg0, %c0_i32 : i32, i32
  }
  func.func @transform_3(%arg0: i32) -> (i32, i32) {
    %c0_i32 = arith.constant 0 : i32
    %c0_i32_0 = arith.constant 0 : i32
    %c0_i32_1 = arith.constant 0 : i32
    return %c0_i32, %c0_i32_0 : i32, i32
  }
  func.func @transform_4(%arg0: i32) -> (i32, i32) {
    %c0_i32 = arith.constant 0 : i32
    %c0_i32_0 = arith.constant 0 : i32
    %c0_i32_1 = arith.constant 0 : i32
    return %c0_i32, %c0_i32_0 : i32, i32
  }
  func.func @transform_5(%arg0: i32) -> (i32, i32) {
    %c0_i32 = arith.constant 0 : i32
    %c0_i32_0 = arith.constant 0 : i32
    %c0_i32_1 = arith.constant 0 : i32
    return %c0_i32, %c0_i32_0 : i32, i32
  }
  func.func @transform_6(%arg0: i32) -> (i32, i32) {
    %c0_i32 = arith.constant 0 : i32
    %c0_i32_0 = arith.constant 0 : i32
    %c0_i32_1 = arith.constant 0 : i32
    return %c0_i32, %c0_i32_0 : i32, i32
  }
  func.func @transform_7(%arg0: i32) -> (i32, i32) {
    %c0_i32 = arith.constant 0 : i32
    %c0_i32_0 = arith.constant 0 : i32
    %c0_i32_1 = arith.constant 0 : i32
    return %c0_i32, %c0_i32_0 : i32, i32
  }
  func.func @transform_8(%arg0: i32) -> (i32, i32) {
    %c0_i32 = arith.constant 0 : i32
    %c0_i32_0 = arith.constant 0 : i32
    %c0_i32_1 = arith.constant 0 : i32
    return %c0_i32, %c0_i32_0 : i32, i32
  }
  func.func @transform_9(%arg0: i32) -> (i32, i32) {
    %c0_i32 = arith.constant 0 : i32
    %c0_i32_0 = arith.constant 0 : i32
    %c0_i32_1 = arith.constant 0 : i32
    return %c0_i32, %c0_i32_0 : i32, i32
  }
  func.func @transform_10(%arg0: i32) -> (i32, i32) {
    %c0_i32 = arith.constant 0 : i32
    %c0_i32_0 = arith.constant 0 : i32
    %c0_i32_1 = arith.constant 0 : i32
    return %c0_i32, %c0_i32_0 : i32, i32
  }
  func.func @transform_11(%arg0: i32) -> (i32, i32) {
    %c0_i32 = arith.constant 0 : i32
    %c0_i32_0 = arith.constant 0 : i32
    %c0_i32_1 = arith.constant 0 : i32
    return %c0_i32, %c0_i32_0 : i32, i32
  }
  func.func @transform_12(%arg0: i32) -> (i32, i32) {
    %c0_i32 = arith.constant 0 : i32
    %c0_i32_0 = arith.constant 0 : i32
    %c0_i32_1 = arith.constant 0 : i32
    return %c0_i32, %c0_i32_0 : i32, i32
  }
  func.func @transform_13(%arg0: i32) -> (i32, i32) {
    %c0_i32 = arith.constant 0 : i32
    %c0_i32_0 = arith.constant 0 : i32
    %c0_i32_1 = arith.constant 0 : i32
    return %c0_i32, %c0_i32_0 : i32, i32
  }
  func.func @transform_14(%arg0: i32) -> (i32, i32) {
    %c0_i32 = arith.constant 0 : i32
    %c0_i32_0 = arith.constant 0 : i32
    %c0_i32_1 = arith.constant 0 : i32
    return %c0_i32, %c0_i32_0 : i32, i32
  }
  func.func @transform_15(%arg0: i32) -> (i32, i32) {
    %c0_i32 = arith.constant 0 : i32
    %c0_i32_0 = arith.constant 0 : i32
    return %c0_i32, %arg0 : i32, i32
  }
}

</mosaic_0001>

<bundles_post_ra>
// kernel: _rate_predictor_impl.1
= control target key start
LH: loop header
LB: loop body
LE: loop exit
PB: predicated region body
PF: predicated region fallthrough
CT: control target
= control target key end

     0   :  { %vm63_vm0 = vcmask 261120   ;;  %s628_s0 = inlined_call_operand.vmem [shape: f32[8,32], index: 0, kind: input, shape index: {}]   ;;  %s629_s1 = inlined_call_operand.vmem [shape: f32[8,32], index: 1, kind: input, shape index: {}]   ;;  %s630_s2 = inlined_call_operand.vmem [shape: f32[8,32], index: 2, kind: input, shape index: {}]   ;;  %s631_s3 = inlined_call_operand.vmem [shape: f32[32,128], index: 3, kind: input, shape index: {}]   ;;  %s632_s4 = inlined_call_operand.vmem [shape: f32[1,128], index: 4, kind: input, shape index: {}]   ;;  %s633_s5 = inlined_call_operand.vmem [shape: f32[128,128], index: 5, kind: input, shape index: {}]   ;;  %s634_s6 = inlined_call_operand.vmem [shape: f32[1,128], index: 6, kind: input, shape index: {}]   ;;  %s635_s7 = inlined_call_operand.vmem [shape: f32[32,128], index: 7, kind: input, shape index: {}]   ;;  %s636_s8 = inlined_call_operand.vmem [shape: f32[128,128], index: 8, kind: input, shape index: {}]   ;;  %s637_s9 = inlined_call_operand.vmem [shape: f32[32,128], index: 9, kind: input, shape index: {}]   ;;  %s638_s10 = inlined_call_operand.vmem [shape: f32[1,128], index: 10, kind: input, shape index: {}]   ;;  %s639_s11 = inlined_call_operand.vmem [shape: f32[128,128], index: 11, kind: input, shape index: {}]   ;;  %s640_s12 = inlined_call_operand.vmem [shape: f32[1,128], index: 12, kind: input, shape index: {}]   ;;  %s641_s13 = inlined_call_operand.vmem [shape: f32[1,128], index: 13, kind: input, shape index: {}]   ;;  %s642_s14 = inlined_call_operand.<no memory space> [shape: f32[1,1], index: 14, kind: input, shape index: {}]   ;;  %s643_s15 = inlined_call_operand.hbm [shape: f32[1,8], index: 15, kind: output, shape index: {}]  }
   0x1   :  { %v58_v0 = vld [vmem:[%s631_s3 + $0x18] sm:$0xff]  ;;  %v57_v1 = vld [vmem:[%s631_s3 + $0x10] sm:$0xff]  ;;  %v56_v3 = vld [vmem:[%s631_s3 + $0x8] sm:$0xff] }
   0x2   :  { %79 = vmatpush.msra.mxu0 %v58_v0  ;;  %v103_v2 = vld [vmem:[%s633_s5 + $0x78] sm:$0xff]  ;;  %v102_v4 = vld [vmem:[%s633_s5 + $0x70] sm:$0xff]  ;;  %v101_v5 = vld [vmem:[%s633_s5 + $0x68] sm:$0xff] }
   0x3   :  { %108 = vmatpush.msra.mxu1 %v103_v2  ;;  %v55_v6 = vld [vmem:[%s631_s3] sm:$0xff]  ;;  %v99_v9 = vld [vmem:[%s633_s5 + $0x58] sm:$0xff] }
   0x4   :  { %80 = vmatpush.msra.mxu0 %v57_v1  ;;  %v53_v7 = vld [vmem:[%s629_s1] sm:$0xff] }
   0x5   :  { %109 = vmatpush.msra.mxu1 %v102_v4  ;;  %v100_v8 = vld [vmem:[%s633_s5 + $0x60] sm:$0xff] }
   0x6   :  { %81 = vmatpush.msra.mxu0 %v56_v3 }
   0x7   :  { %110 = vmatpush.msra.mxu1 %v101_v5 }
   0x8   :  { %82 = vmatpush.msra.mxu0 %v55_v6 }
   0x9   :  { %299 = vmatmul.msk.f32.vlgmr.msra.gmra.mxu0 %vm63_vm0, %v53_v7  ;;  %111 = vmatpush.msra.mxu1 %v100_v8 }
   0xa   :  { %21 = vsyncpa [#allocation4], 0  ;;  %v98_v10 = vld [vmem:[%s633_s5 + $0x50] sm:$0xff]  ;;  %v97_v11 = vld [vmem:[%s633_s5 + $0x48] sm:$0xff]  ;;  %vm281_vm1 = vcmask 57344  }
   0xb   :  { %112 = vmatpush.msra.mxu1 %v99_v9  ;;  %v96_v12 = vld [vmem:[%s633_s5 + $0x40] sm:$0xff]  ;;  %v95_v13 = vld [vmem:[%s633_s5 + $0x38] sm:$0xff]  ;;  %v94_v14 = vld [vmem:[%s633_s5 + $0x30] sm:$0xff] }
   0xc   :  { %v93_v15 = vld [vmem:[%s633_s5 + $0x28] sm:$0xff]  ;;  %v92_v16 = vld [vmem:[%s633_s5 + $0x20] sm:$0xff]  ;;  %v91_v17 = vld [vmem:[%s633_s5 + $0x18] sm:$0xff] }
   0xd   :  { %113 = vmatpush.msra.mxu1 %v98_v10  ;;  %v90_v18 = vld [vmem:[%s633_s5 + $0x10] sm:$0xff]  ;;  %v89_v19 = vld [vmem:[%s633_s5 + $0x8] sm:$0xff]  ;;  %v88_v20 = vld [vmem:[%s633_s5] sm:$0xff]  ;;  %s334_s5 = smov [#allocation3]  }
   0xe   :  { %v147_v21 = vld [vmem:[%s636_s8 + $0x78] sm:$0xff]  ;;  %v146_v22 = vld [vmem:[%s636_s8 + $0x70] sm:$0xff]  ;;  %v145_v23 = vld [vmem:[%s636_s8 + $0x68] sm:$0xff]  ;;  %s288_s19 = sshll.u32 %s334_s5, 4  ;;  %s289_s19 = int_to_ptr.vmem [resolvable:$true] %s288_s19 }
   0xf   :  { %114 = vmatpush.msra.mxu1 %v97_v11  ;;  %148 = vmatpush.msra.mxu2 %v147_v21  ;;  %v144_v24 = vld [vmem:[%s636_s8 + $0x60] sm:$0xff]  ;;  %v131_v25 = vld [vmem:[%s635_s7 + $0x18] sm:$0xff]  ;;  %v130_v26 = vld [vmem:[%s635_s7 + $0x10] sm:$0xff]  ;;  %v274_v21 = vstv %s642_s14 }
  0x10   :  { %183 = vmatpush.msrb.mxu0 %v131_v25  ;;  %v143_v27 = vld [vmem:[%s636_s8 + $0x58] sm:$0xff]  ;;  %v129_v28 = vld [vmem:[%s635_s7 + $0x8] sm:$0xff]  ;;  %v142_v29 = vld [vmem:[%s636_s8 + $0x50] sm:$0xff] }
  0x11   :  { %115 = vmatpush.msra.mxu1 %v96_v12  ;;  %149 = vmatpush.msra.mxu2 %v146_v22  ;;  %v141_v30 = vld [vmem:[%s636_s8 + $0x48] sm:$0xff]  ;;  %v140_v31 = vld [vmem:[%s636_s8 + $0x40] sm:$0xff]  ;;  %v139_v32 = vld [vmem:[%s636_s8 + $0x38] sm:$0xff] }
  0x12   :  { %184 = vmatpush.msrb.mxu0 %v130_v26  ;;  %v138_v33 = vld [vmem:[%s636_s8 + $0x30] sm:$0xff]  ;;  %v137_v34 = vld [vmem:[%s636_s8 + $0x28] sm:$0xff]  ;;  %v136_v35 = vld [vmem:[%s636_s8 + $0x20] sm:$0xff] }
  0x13   :  { %116 = vmatpush.msra.mxu1 %v95_v13  ;;  %150 = vmatpush.msra.mxu2 %v145_v23  ;;  %v135_v36 = vld [vmem:[%s636_s8 + $0x18] sm:$0xff]  ;;  %v303_v37 = vld [vmem:[%s632_s4] ss:$0 sm:$0xff]  ;;  %v134_v38 = vld [vmem:[%s636_s8 + $0x10] sm:$0xff] }
  0x14   :  { %185 = vmatpush.msrb.mxu0 %v129_v28  ;;  %v133_v42 = vld [vmem:[%s636_s8 + $0x8] sm:$0xff]  ;;  %v128_v43 = vld [vmem:[%s635_s7] sm:$0xff]  ;;  %v194_v46 = vld [vmem:[%s637_s9 + $0x18] sm:$0xff]  ;;  %s290_s7 = sshll.u32 %s643_s15, 4  ;;  %s291_s7 = int_to_ptr.hbm [resolvable:$true] %s290_s7 }
  0x15   :  { %117 = vmatpush.msra.mxu1 %v94_v14  ;;  %151 = vmatpush.msra.mxu2 %v144_v24  ;;  %v132_v44 = vld [vmem:[%s636_s8] sm:$0xff]  ;;  %v193_v47 = vld [vmem:[%s637_s9 + $0x10] sm:$0xff]  ;;  %v240_v48 = vld [vmem:[%s639_s11 + $0x78] sm:$0xff] }
  0x16   :  { %186 = vmatpush.msrb.mxu0 %v128_v43  ;;  %v52_v45 = vld [vmem:[%s628_s0] sm:$0xff]  ;;  %v192_v49 = vld [vmem:[%s637_s9 + $0x8] sm:$0xff]  ;;  %245 = vmatpush.msra.mxu3 %v240_v48  ;;  %v239_v50 = vld [vmem:[%s639_s11 + $0x70] sm:$0xff] }
  0x17   :  { %118 = vmatpush.msra.mxu1 %v93_v15  ;;  %152 = vmatpush.msra.mxu2 %v143_v27  ;;  %v238_v51 = vld [vmem:[%s639_s11 + $0x68] sm:$0xff]  ;;  %v191_v52 = vld [vmem:[%s637_s9] sm:$0xff]  ;;  %v236_v55 = vld [vmem:[%s639_s11 + $0x58] sm:$0xff] }
  0x18   :  { %300 = vmatmul.msk.f32.vlgmr.msrb.gmra.mxu0 %vm63_vm0, %v52_v45  ;;  %246 = vmatpush.msra.mxu3 %v239_v50  ;;  %v54_v53 = vld [vmem:[%s630_s2] sm:$0xff]  ;;  %v235_v56 = vld [vmem:[%s639_s11 + $0x50] sm:$0xff]  ;;  %v234_v57 = vld [vmem:[%s639_s11 + $0x48] sm:$0xff] }
  0x19   :  { %119 = vmatpush.msra.mxu1 %v92_v16  ;;  %153 = vmatpush.msra.mxu2 %v142_v29  ;;  %v237_v54 = vld [vmem:[%s639_s11 + $0x60] sm:$0xff]  ;;  %v232_v62 = vld [vmem:[%s639_s11 + $0x38] sm:$0xff]  ;;  %v231_v63 = vld [vmem:[%s639_s11 + $0x30] sm:$0xff] }
  0x1a   :  { %210 = vmatpush.msra.mxu0 %v194_v46  ;;  %247 = vmatpush.msra.mxu3 %v238_v51  ;;  %v233_v58 = vld [vmem:[%s639_s11 + $0x40] sm:$0xff]  ;;  %v230_v0 = vld [vmem:[%s639_s11 + $0x28] sm:$0xff]  ;;  %v228_v2 = vld [vmem:[%s639_s11 + $0x18] sm:$0xff] }
  0x1b   :  { %120 = vmatpush.msra.mxu1 %v91_v17  ;;  %154 = vmatpush.msra.mxu2 %v141_v30  ;;  %v304_v59 = vld [vmem:[%s634_s6] ss:$0 sm:$0xff]  ;;  %v227_v3 = vld [vmem:[%s639_s11 + $0x10] sm:$0xff]  ;;  %v226_v4 = vld [vmem:[%s639_s11 + $0x8] sm:$0xff] }
  0x1c   :  { %211 = vmatpush.msra.mxu0 %v193_v47  ;;  %248 = vmatpush.msra.mxu3 %v237_v54  ;;  %v229_v1 = vld [vmem:[%s639_s11 + $0x20] sm:$0xff] }
  0x1d   :  { %121 = vmatpush.msra.mxu1 %v90_v18  ;;  %155 = vmatpush.msra.mxu2 %v140_v31  ;;  %v225_v5 = vld [vmem:[%s639_s11] sm:$0xff] }
  0x1e   :  { %212 = vmatpush.msra.mxu0 %v192_v49  ;;  %249 = vmatpush.msra.mxu3 %v236_v55  ;;  %v305_v10 = vld [vmem:[%s638_s10] ss:$0 sm:$0xff] }
  0x1f   :  { %122 = vmatpush.msra.mxu1 %v89_v19  ;;  %156 = vmatpush.msra.mxu2 %v139_v32  ;;  %v306_v14 = vld [vmem:[%s640_s12] ss:$0 sm:$0xff] }
  0x20   :  { %213 = vmatpush.msra.mxu0 %v191_v52  ;;  %250 = vmatpush.msra.mxu3 %v235_v56  ;;  %v307_v17 = vld [vmem:[%s641_s13] ss:$0 sm:$0xff] }
  0x21   :  { %123 = vmatpush.msra.mxu1 %v88_v20  ;;  %157 = vmatpush.msra.mxu2 %v138_v33  ;;  %v277_v20 = vlaneseq }
  0x22   :  { %301 = vmatmul.msk.f32.vlgmr.msra.gmra.mxu0 %vm63_vm0, %v54_v53  ;;  %251 = vmatpush.msra.mxu3 %v234_v57 }
  0x23   :  { %158 = vmatpush.msra.mxu2 %v137_v34  ;;  %v278_v22 = vand.u32 127, %v277_v20 }
  0x24   :  { %252 = vmatpush.msra.mxu3 %v233_v58 }
  0x25   :  { %159 = vmatpush.msra.mxu2 %v136_v35 }
  0x26   :  { %253 = vmatpush.msra.mxu3 %v232_v62 }
  0x27   :  { %160 = vmatpush.msra.mxu2 %v135_v36 }
  0x28   :  { %254 = vmatpush.msra.mxu3 %v231_v63 }
  0x29   :  { %161 = vmatpush.msra.mxu2 %v134_v38 }
  0x2a   :  { %255 = vmatpush.msra.mxu3 %v230_v0 }
  0x2b   :  { %162 = vmatpush.msra.mxu2 %v133_v42 }
  0x2c   :  { %256 = vmatpush.msra.mxu3 %v229_v1 }
  0x2d   :  { %163 = vmatpush.msra.mxu2 %v132_v44 }
  0x2e   :  { %257 = vmatpush.msra.mxu3 %v228_v2 }
  0x30   :  { %258 = vmatpush.msra.mxu3 %v227_v3 }
  0x32   :  { %259 = vmatpush.msra.mxu3 %v226_v4 }
  0x34   :  { %260 = vmatpush.msra.mxu3 %v225_v5 }
  0x86   :  { %v84_v39 = vpop.f32.mrf.mxu0 }
  0x87   :  { %v85_v40 = vadd.f32 %v303_v37, %v84_v39 }
  0x89   :  { %v87_v41 = vmax.f32 %v85_v40, 0.0 }
  0x8b   :  { %124 = vmatmul.f32.vlgmr.msra.gmra.mxu1 %v87_v41 }
  0x95   :  { %v188_v6 = vpop.f32.mrf.mxu0 }
  0x9f   :  { %v215_v8 = vpop.f32.mrf.mxu0 }
 0x108   :  { %v125_v60 = vpop.f32.mrf.mxu1 }
 0x109   :  { %v126_v61 = vadd.f32 %v304_v59, %v125_v60 }
 0x10b   :  { %164 = vmatmul.f32.vlgmr.msra.gmra.mxu2 %v126_v61 }
 0x18e   :  { %v165_v7 = vpop.f32.mrf.mxu2 }
 0x18f   :  { %v189_v9 = vadd.f32 %v188_v6, %v165_v7 }
 0x191   :  { %v218_v11 = vadd.f32 %v215_v8, %v189_v9 }
 0x193   :  { %v223_v12 = vadd.f32 %v305_v10, %v218_v11 }
 0x195   :  { %v224_v13 = vmax.f32 %v223_v12, 0.0 }
 0x197   :  { %261 = vmatmul.f32.vlgmr.msra.gmra.mxu3 %v224_v13 }
 0x21a   :  { %v262_v15 = vpop.f32.mrf.mxu3 }
 0x21b   :  { %v263_v16 = vadd.f32 %v306_v14, %v262_v15 }
 0x21d   :  { %v265_v18 = vmax.f32 %v263_v16, 0.0 }
 0x21f   :  { %v270_v19 = vmul.f32 %v307_v17, %v265_v18 }
 0x221   :  { %271 = vadd.xlane.f32.xlu0 %v270_v19 }
 0x294   :  { %v272_v23 = vpop.xlane.xlu0 %271 }
 0x295   :  { %v275_v24 = vadd.f32 %v274_v21, %v272_v23 }
 0x297   :  { %v279_v25 = vperm.slane %v275_v24, %v278_v22 }
 0x299   :  { %282 = vst.msk [vmem:[#allocation3] sm:$0x1] %vm281_vm1, %v279_v25 }
 0x29a   :  { %293 = dma.vmem_to_hbm [thread:$0]  %s289_s19, 16, %s291_s7, [#allocation4]  }
 0x29b   :  { %332 = dma.done.wait [#allocation4], 16  }
 0x29c   :  { %333 = vsyncadd [#allocation4], 4294967280 }
 0x29d   :  { %298 = vsyncpa [#allocation4], 1 }

// kernel: _rate_predictor_impl.1
= control target key start
LH: loop header
LB: loop body
LE: loop exit
PB: predicated region body
PF: predicated region fallthrough
CT: control target
= control target key end

     0   :  { %vm63_vm0 = vcmask 261120   ;;  %s628_s0 = inlined_call_operand.vmem [shape: f32[8,32], index: 0, kind: input, shape index: {}]   ;;  %s629_s1 = inlined_call_operand.vmem [shape: f32[8,32], index: 1, kind: input, shape index: {}]   ;;  %s630_s2 = inlined_call_operand.vmem [shape: f32[8,32], index: 2, kind: input, shape index: {}]   ;;  %s631_s3 = inlined_call_operand.vmem [shape: f32[32,128], index: 3, kind: input, shape index: {}]   ;;  %s632_s4 = inlined_call_operand.vmem [shape: f32[1,128], index: 4, kind: input, shape index: {}]   ;;  %s633_s5 = inlined_call_operand.vmem [shape: f32[128,128], index: 5, kind: input, shape index: {}]   ;;  %s634_s6 = inlined_call_operand.vmem [shape: f32[1,128], index: 6, kind: input, shape index: {}]   ;;  %s635_s7 = inlined_call_operand.vmem [shape: f32[32,128], index: 7, kind: input, shape index: {}]   ;;  %s636_s8 = inlined_call_operand.vmem [shape: f32[128,128], index: 8, kind: input, shape index: {}]   ;;  %s637_s9 = inlined_call_operand.vmem [shape: f32[32,128], index: 9, kind: input, shape index: {}]   ;;  %s638_s10 = inlined_call_operand.vmem [shape: f32[1,128], index: 10, kind: input, shape index: {}]   ;;  %s639_s11 = inlined_call_operand.vmem [shape: f32[128,128], index: 11, kind: input, shape index: {}]   ;;  %s640_s12 = inlined_call_operand.vmem [shape: f32[1,128], index: 12, kind: input, shape index: {}]   ;;  %s641_s13 = inlined_call_operand.vmem [shape: f32[1,128], index: 13, kind: input, shape index: {}]   ;;  %s642_s14 = inlined_call_operand.<no memory space> [shape: f32[1,1], index: 14, kind: input, shape index: {}]   ;;  %s643_s15 = inlined_call_operand.hbm [shape: f32[1,8], index: 15, kind: output, shape index: {}]  }
   0x1   :  { %v58_v0 = vld [vmem:[%s631_s3 + $0x18] sm:$0xff]  ;;  %v57_v1 = vld [vmem:[%s631_s3 + $0x10] sm:$0xff]  ;;  %v56_v3 = vld [vmem:[%s631_s3 + $0x8] sm:$0xff] }
   0x2   :  { %79 = vmatpush.msra.mxu0 %v58_v0  ;;  %v103_v2 = vld [vmem:[%s633_s5 + $0x78] sm:$0xff]  ;;  %v102_v4 = vld [vmem:[%s633_s5 + $0x70] sm:$0xff]  ;;  %v101_v5 = vld [vmem:[%s633_s5 + $0x68] sm:$0xff] }
   0x3   :  { %108 = vmatpush.msra.mxu1 %v103_v2  ;;  %v55_v6 = vld [vmem:[%s631_s3] sm:$0xff]  ;;  %v99_v9 = vld [vmem:[%s633_s5 + $0x58] sm:$0xff] }
   0x4   :  { %80 = vmatpush.msra.mxu0 %v57_v1  ;;  %v53_v7 = vld [vmem:[%s629_s1] sm:$0xff] }
   0x5   :  { %109 = vmatpush.msra.mxu1 %v102_v4  ;;  %v100_v8 = vld [vmem:[%s633_s5 + $0x60] sm:$0xff] }
   0x6   :  { %81 = vmatpush.msra.mxu0 %v56_v3 }
   0x7   :  { %110 = vmatpush.msra.mxu1 %v101_v5 }
   0x8   :  { %82 = vmatpush.msra.mxu0 %v55_v6 }
   0x9   :  { %299 = vmatmul.msk.f32.vlgmr.msra.gmra.mxu0 %vm63_vm0, %v53_v7  ;;  %111 = vmatpush.msra.mxu1 %v100_v8 }
   0xa   :  { %21 = vsyncpa [#allocation4], 0  ;;  %v98_v10 = vld [vmem:[%s633_s5 + $0x50] sm:$0xff]  ;;  %v97_v11 = vld [vmem:[%s633_s5 + $0x48] sm:$0xff]  ;;  %vm281_vm1 = vcmask 57344  }
   0xb   :  { %112 = vmatpush.msra.mxu1 %v99_v9  ;;  %v96_v12 = vld [vmem:[%s633_s5 + $0x40] sm:$0xff]  ;;  %v95_v13 = vld [vmem:[%s633_s5 + $0x38] sm:$0xff]  ;;  %v94_v14 = vld [vmem:[%s633_s5 + $0x30] sm:$0xff] }
   0xc   :  { %v93_v15 = vld [vmem:[%s633_s5 + $0x28] sm:$0xff]  ;;  %v92_v16 = vld [vmem:[%s633_s5 + $0x20] sm:$0xff]  ;;  %v91_v17 = vld [vmem:[%s633_s5 + $0x18] sm:$0xff] }
   0xd   :  { %113 = vmatpush.msra.mxu1 %v98_v10  ;;  %v90_v18 = vld [vmem:[%s633_s5 + $0x10] sm:$0xff]  ;;  %v89_v19 = vld [vmem:[%s633_s5 + $0x8] sm:$0xff]  ;;  %v88_v20 = vld [vmem:[%s633_s5] sm:$0xff]  ;;  %s334_s5 = smov [#allocation3]  }
   0xe   :  { %v147_v21 = vld [vmem:[%s636_s8 + $0x78] sm:$0xff]  ;;  %v146_v22 = vld [vmem:[%s636_s8 + $0x70] sm:$0xff]  ;;  %v145_v23 = vld [vmem:[%s636_s8 + $0x68] sm:$0xff]  ;;  %s288_s19 = sshll.u32 %s334_s5, 4  ;;  %s289_s19 = int_to_ptr.vmem [resolvable:$true] %s288_s19 }
   0xf   :  { %114 = vmatpush.msra.mxu1 %v97_v11  ;;  %148 = vmatpush.msra.mxu2 %v147_v21  ;;  %v144_v24 = vld [vmem:[%s636_s8 + $0x60] sm:$0xff]  ;;  %v131_v25 = vld [vmem:[%s635_s7 + $0x18] sm:$0xff]  ;;  %v130_v26 = vld [vmem:[%s635_s7 + $0x10] sm:$0xff]  ;;  %v274_v21 = vstv %s642_s14 }
  0x10   :  { %183 = vmatpush.msrb.mxu0 %v131_v25  ;;  %v143_v27 = vld [vmem:[%s636_s8 + $0x58] sm:$0xff]  ;;  %v129_v28 = vld [vmem:[%s635_s7 + $0x8] sm:$0xff]  ;;  %v142_v29 = vld [vmem:[%s636_s8 + $0x50] sm:$0xff] }
  0x11   :  { %115 = vmatpush.msra.mxu1 %v96_v12  ;;  %149 = vmatpush.msra.mxu2 %v146_v22  ;;  %v141_v30 = vld [vmem:[%s636_s8 + $0x48] sm:$0xff]  ;;  %v140_v31 = vld [vmem:[%s636_s8 + $0x40] sm:$0xff]  ;;  %v139_v32 = vld [vmem:[%s636_s8 + $0x38] sm:$0xff] }
  0x12   :  { %184 = vmatpush.msrb.mxu0 %v130_v26  ;;  %v138_v33 = vld [vmem:[%s636_s8 + $0x30] sm:$0xff]  ;;  %v137_v34 = vld [vmem:[%s636_s8 + $0x28] sm:$0xff]  ;;  %v136_v35 = vld [vmem:[%s636_s8 + $0x20] sm:$0xff] }
  0x13   :  { %116 = vmatpush.msra.mxu1 %v95_v13  ;;  %150 = vmatpush.msra.mxu2 %v145_v23  ;;  %v135_v36 = vld [vmem:[%s636_s8 + $0x18] sm:$0xff]  ;;  %v303_v37 = vld [vmem:[%s632_s4] ss:$0 sm:$0xff]  ;;  %v134_v38 = vld [vmem:[%s636_s8 + $0x10] sm:$0xff] }
  0x14   :  { %185 = vmatpush.msrb.mxu0 %v129_v28  ;;  %v133_v42 = vld [vmem:[%s636_s8 + $0x8] sm:$0xff]  ;;  %v128_v43 = vld [vmem:[%s635_s7] sm:$0xff]  ;;  %v194_v46 = vld [vmem:[%s637_s9 + $0x18] sm:$0xff]  ;;  %s290_s7 = sshll.u32 %s643_s15, 4  ;;  %s291_s7 = int_to_ptr.hbm [resolvable:$true] %s290_s7 }
  0x15   :  { %117 = vmatpush.msra.mxu1 %v94_v14  ;;  %151 = vmatpush.msra.mxu2 %v144_v24  ;;  %v132_v44 = vld [vmem:[%s636_s8] sm:$0xff]  ;;  %v193_v47 = vld [vmem:[%s637_s9 + $0x10] sm:$0xff]  ;;  %v240_v48 = vld [vmem:[%s639_s11 + $0x78] sm:$0xff] }
  0x16   :  { %186 = vmatpush.msrb.mxu0 %v128_v43  ;;  %v52_v45 = vld [vmem:[%s628_s0] sm:$0xff]  ;;  %v192_v49 = vld [vmem:[%s637_s9 + $0x8] sm:$0xff]  ;;  %245 = vmatpush.msra.mxu3 %v240_v48  ;;  %v239_v50 = vld [vmem:[%s639_s11 + $0x70] sm:$0xff] }
  0x17   :  { %118 = vmatpush.msra.mxu1 %v93_v15  ;;  %152 = vmatpush.msra.mxu2 %v143_v27  ;;  %v238_v51 = vld [vmem:[%s639_s11 + $0x68] sm:$0xff]  ;;  %v191_v52 = vld [vmem:[%s637_s9] sm:$0xff]  ;;  %v236_v55 = vld [vmem:[%s639_s11 + $0x58] sm:$0xff] }
  0x18   :  { %300 = vmatmul.msk.f32.vlgmr.msrb.gmra.mxu0 %vm63_vm0, %v52_v45  ;;  %246 = vmatpush.msra.mxu3 %v239_v50  ;;  %v54_v53 = vld [vmem:[%s630_s2] sm:$0xff]  ;;  %v235_v56 = vld [vmem:[%s639_s11 + $0x50] sm:$0xff]  ;;  %v234_v57 = vld [vmem:[%s639_s11 + $0x48] sm:$0xff] }
  0x19   :  { %119 = vmatpush.msra.mxu1 %v92_v16  ;;  %153 = vmatpush.msra.mxu2 %v142_v29  ;;  %v237_v54 = vld [vmem:[%s639_s11 + $0x60] sm:$0xff]  ;;  %v232_v62 = vld [vmem:[%s639_s11 + $0x38] sm:$0xff]  ;;  %v231_v63 = vld [vmem:[%s639_s11 + $0x30] sm:$0xff] }
  0x1a   :  { %210 = vmatpush.msra.mxu0 %v194_v46  ;;  %247 = vmatpush.msra.mxu3 %v238_v51  ;;  %v233_v58 = vld [vmem:[%s639_s11 + $0x40] sm:$0xff]  ;;  %v230_v0 = vld [vmem:[%s639_s11 + $0x28] sm:$0xff]  ;;  %v228_v2 = vld [vmem:[%s639_s11 + $0x18] sm:$0xff] }
  0x1b   :  { %120 = vmatpush.msra.mxu1 %v91_v17  ;;  %154 = vmatpush.msra.mxu2 %v141_v30  ;;  %v304_v59 = vld [vmem:[%s634_s6] ss:$0 sm:$0xff]  ;;  %v227_v3 = vld [vmem:[%s639_s11 + $0x10] sm:$0xff]  ;;  %v226_v4 = vld [vmem:[%s639_s11 + $0x8] sm:$0xff] }
  0x1c   :  { %211 = vmatpush.msra.mxu0 %v193_v47  ;;  %248 = vmatpush.msra.mxu3 %v237_v54  ;;  %v229_v1 = vld [vmem:[%s639_s11 + $0x20] sm:$0xff] }
  0x1d   :  { %121 = vmatpush.msra.mxu1 %v90_v18  ;;  %155 = vmatpush.msra.mxu2 %v140_v31  ;;  %v225_v5 = vld [vmem:[%s639_s11] sm:$0xff] }
  0x1e   :  { %212 = vmatpush.msra.mxu0 %v192_v49  ;;  %249 = vmatpush.msra.mxu3 %v236_v55  ;;  %v305_v10 = vld [vmem:[%s638_s10] ss:$0 sm:$0xff] }
  0x1f   :  { %122 = vmatpush.msra.mxu1 %v89_v19  ;;  %156 = vmatpush.msra.mxu2 %v139_v32  ;;  %v306_v14 = vld [vmem:[%s640_s12] ss:$0 sm:$0xff] }
  0x20   :  { %213 = vmatpush.msra.mxu0 %v191_v52  ;;  %250 = vmatpush.msra.mxu3 %v235_v56  ;;  %v307_v17 = vld [vmem:[%s641_s13] ss:$0 sm:$0xff] }
  0x21   :  { %123 = vmatpush.msra.mxu1 %v88_v20  ;;  %157 = vmatpush.msra.mxu2 %v138_v33  ;;  %v277_v20 = vlaneseq }
  0x22   :  { %301 = vmatmul.msk.f32.vlgmr.msra.gmra.mxu0 %vm63_vm0, %v54_v53  ;;  %251 = vmatpush.msra.mxu3 %v234_v57 }
  0x23   :  { %158 = vmatpush.msra.mxu2 %v137_v34  ;;  %v278_v22 = vand.u32 127, %v277_v20 }
  0x24   :  { %252 = vmatpush.msra.mxu3 %v233_v58 }
  0x25   :  { %159 = vmatpush.msra.mxu2 %v136_v35 }
  0x26   :  { %253 = vmatpush.msra.mxu3 %v232_v62 }
  0x27   :  { %160 = vmatpush.msra.mxu2 %v135_v36 }
  0x28   :  { %254 = vmatpush.msra.mxu3 %v231_v63 }
  0x29   :  { %161 = vmatpush.msra.mxu2 %v134_v38 }
  0x2a   :  { %255 = vmatpush.msra.mxu3 %v230_v0 }
  0x2b   :  { %162 = vmatpush.msra.mxu2 %v133_v42 }
  0x2c   :  { %256 = vmatpush.msra.mxu3 %v229_v1 }
  0x2d   :  { %163 = vmatpush.msra.mxu2 %v132_v44 }
  0x2e   :  { %257 = vmatpush.msra.mxu3 %v228_v2 }
  0x30   :  { %258 = vmatpush.msra.mxu3 %v227_v3 }
  0x32   :  { %259 = vmatpush.msra.mxu3 %v226_v4 }
  0x34   :  { %260 = vmatpush.msra.mxu3 %v225_v5 }
  0x86   :  { %v84_v39 = vpop.f32.mrf.mxu0 }
  0x87   :  { %v85_v40 = vadd.f32 %v303_v37, %v84_v39 }
  0x89   :  { %v87_v41 = vmax.f32 %v85_v40, 0.0 }
  0x8b   :  { %124 = vmatmul.f32.vlgmr.msra.gmra.mxu1 %v87_v41 }
  0x95   :  { %v188_v6 = vpop.f32.mrf.mxu0 }
  0x9f   :  { %v215_v8 = vpop.f32.mrf.mxu0 }
 0x108   :  { %v125_v60 = vpop.f32.mrf.mxu1 }
 0x109   :  { %v126_v61 = vadd.f32 %v304_v59, %v125_v60 }
 0x10b   :  { %164 = vmatmul.f32.vlgmr.msra.gmra.mxu2 %v126_v61 }
 0x18e   :  { %v165_v7 = vpop.f32.mrf.mxu2 }
 0x18f   :  { %v189_v9 = vadd.f32 %v188_v6, %v165_v7 }
 0x191   :  { %v218_v11 = vadd.f32 %v215_v8, %v189_v9 }
 0x193   :  { %v223_v12 = vadd.f32 %v305_v10, %v218_v11 }
 0x195   :  { %v224_v13 = vmax.f32 %v223_v12, 0.0 }
 0x197   :  { %261 = vmatmul.f32.vlgmr.msra.gmra.mxu3 %v224_v13 }
 0x21a   :  { %v262_v15 = vpop.f32.mrf.mxu3 }
 0x21b   :  { %v263_v16 = vadd.f32 %v306_v14, %v262_v15 }
 0x21d   :  { %v265_v18 = vmax.f32 %v263_v16, 0.0 }
 0x21f   :  { %v270_v19 = vmul.f32 %v307_v17, %v265_v18 }
 0x221   :  { %271 = vadd.xlane.f32.xlu0 %v270_v19 }
 0x294   :  { %v272_v23 = vpop.xlane.xlu0 %271 }
 0x295   :  { %v275_v24 = vadd.f32 %v274_v21, %v272_v23 }
 0x297   :  { %v279_v25 = vperm.slane %v275_v24, %v278_v22 }
 0x299   :  { %282 = vst.msk [vmem:[#allocation3] sm:$0x1] %vm281_vm1, %v279_v25 }
 0x29a   :  { %293 = dma.vmem_to_hbm [thread:$0]  %s289_s19, 16, %s291_s7, [#allocation4]  }
 0x29b   :  { %332 = dma.done.wait [#allocation4], 16  }
 0x29c   :  { %333 = vsyncadd [#allocation4], 4294967280 }
 0x29d   :  { %298 = vsyncpa [#allocation4], 1 }

</bundles_post_ra>
